<compile_context>
chip_gen: v5e
topology: v5e:2x2
jax: 0.10.0
libtpu: 0.0.40
codegen_flags: <defaults>
</compile_context>

<pallas_src>
import jax
import jax.numpy as jnp
import numpy as np
from jax.experimental import pallas as pl
from jax.experimental.pallas import tpu as pltpu


# ---------------------------------------------------------------------------
# Kernels
# ---------------------------------------------------------------------------

def _projection_kernel(x_ref, w1_ref, b1_ref, h_ref, acc_ref):
    """h = x @ W1 + b1, reduction over the vocab axis (grid axis 0)."""
    k = pl.program_id(0)

    @pl.when(k == 0)
    def _():
        acc_ref[...] = jnp.zeros_like(acc_ref)

    acc_ref[...] += jnp.dot(
        x_ref[...], w1_ref[...], preferred_element_type=jnp.float32
    )

    @pl.when(k == pl.num_programs(0) - 1)
    def _():
        h_ref[...] = (acc_ref[...] + b1_ref[...]).astype(h_ref.dtype)


def _output_kernel(h_ref, w2_ref, b2_ref, o_ref):
    """sigmoid(h @ W2_tile + b2_tile) for one lane-dense vocab tile."""
    logits = jnp.dot(
        h_ref[...], w2_ref[...], preferred_element_type=jnp.float32
    )
    logits = logits + b2_ref[...]
    # sigmoid: exp on the EUP, approximate reciprocal on the EUP (keeps the
    # epilogue off the VALU slots).
    o_ref[...] = pl.reciprocal(1.0 + jnp.exp(-logits), approx=True).astype(
        o_ref.dtype
    )


# ---------------------------------------------------------------------------
# Wrapper
# ---------------------------------------------------------------------------

def _pick_tile(dim, preferred=512):
    """Largest multiple of 128 <= preferred that divides dim (else full dim)."""
    if dim <= preferred:
        return dim
    t = preferred
    while t >= 128:
        if dim % t == 0:
            return t
        t -= 128
    return dim


def prepare_params(w_proj, b_proj, w_out, b_out, compute_dtype=jnp.bfloat16):
    """One-time layout / dtype conversion (keep OUT of the steady-state path).

    PyTorch nn.Linear stores weight as (out_features, in_features); the kernel
    wants (in, out) so both matmuls are plain row-major MXU dots. Weights go to
    bf16 (halves HBM traffic, doubles MXU throughput on v6e/v7x); biases stay
    f32 because they are added to the f32 accumulator.
    """
    w1 = jnp.asarray(w_proj, compute_dtype).T               # (V, E)
    b1 = jnp.asarray(b_proj, jnp.float32).reshape(1, -1)    # (1, E)
    w2 = jnp.asarray(w_out, compute_dtype).T                # (E, V)
    b2 = jnp.asarray(b_out, jnp.float32).reshape(1, -1)     # (1, V)
    return w1, b1, w2, b2


def word2vec_forward(x, w1, b1, w2, b2):
    """Fused Word2Vec forward.

    x  : (B, V) float32
    w1 : (V, E) bf16   (pre-transposed projection weight)
    b1 : (1, E) f32
    w2 : (E, V) bf16   (pre-transposed output weight)
    b2 : (1, V) f32
    returns (B, V) float32
    """
    compute_dtype = w1.dtype
    out_dtype = x.dtype

    B0, V = x.shape
    E = w1.shape[1]

    # Pad batch to a sublane multiple (8) so block shapes are legal.
    pad = (-B0) % 8
    if pad:
        x = jnp.pad(x, ((0, pad), (0, 0)))
    B = B0 + pad

    x_c = x.astype(compute_dtype)

    tk = _pick_tile(V, 512)   # contraction tile (projection)
    tn = _pick_tile(V, 512)   # output-vocab tile (second matmul)

    # ---- Stage 1: h = x @ W1 + b1  (reduction over vocab, "arbitrary") -----
    h = pl.pallas_call(
        _projection_kernel,
        out_shape=jax.ShapeDtypeStruct((B, E), compute_dtype),
        grid=(V // tk,),
        in_specs=[
            pl.BlockSpec((B, tk), lambda k: (0, k)),
            pl.BlockSpec((tk, E), lambda k: (k, 0)),
            pl.BlockSpec((1, E), lambda k: (0, 0)),
        ],
        out_specs=pl.BlockSpec((B, E), lambda k: (0, 0)),
        scratch_shapes=[pltpu.VMEM((B, E), jnp.float32)],
        compiler_params=pltpu.CompilerParams(
            dimension_semantics=("arbitrary",),
        ),
    )(x_c, w1, b1)

    # ---- Stage 2: sigmoid(h @ W2 + b2), tiled over output vocab ------------
    out = pl.pallas_call(
        _output_kernel,
        out_shape=jax.ShapeDtypeStruct((B, V), out_dtype),
        grid=(V // tn,),
        in_specs=[
            pl.BlockSpec((B, E), lambda j: (0, 0)),   # tiny, stays resident
            pl.BlockSpec((E, tn), lambda j: (0, j)),  # streamed weight tile
            pl.BlockSpec((1, tn), lambda j: (0, j)),
        ],
        out_specs=pl.BlockSpec((B, tn), lambda j: (0, j)),
        compiler_params=pltpu.CompilerParams(
            # "parallel" lets v7x shard vocab tiles across its 2 TensorCores;
            # harmless on single-TC v5e/v6e.
            dimension_semantics=("parallel",),
            # Sized for v7x's 64 MiB VMEM; tiles here are far below this.
            vmem_limit_bytes=32 * 1024 * 1024,
        ),
    )(h, w2, b2)

    return out[:B0]


# ---------------------------------------------------------------------------
# Demo / correctness check
# ---------------------------------------------------------------------------

if __name__ == "__main__":
    batch = 8
    word_sum = 2048        # vocab size (multiple of 128 -> lane-dense tiles)
    embedding_size = 128

    key = jax.random.PRNGKey(0)
    kx, kw1, kb1, kw2, kb2 = jax.random.split(key, 5)

    x = jax.random.normal(kx, (batch, word_sum), dtype=jnp.float32)

    # PyTorch nn.Linear parameter shapes: weight (out, in), bias (out,).
    w_proj = jax.random.normal(kw1, (embedding_size, word_sum), jnp.float32) * 0.05
    b_proj = jax.random.normal(kb1, (embedding_size,), jnp.float32) * 0.05
    w_out = jax.random.normal(kw2, (word_sum, embedding_size), jnp.float32) * 0.05
    b_out = jax.random.normal(kb2, (word_sum,), jnp.float32) * 0.05

    # One-time layout/dtype prep (not part of the per-call path).
    w1, b1, w2, b2 = prepare_params(w_proj, b_proj, w_out, b_out)

    out = jax.block_until_ready(word2vec_forward(x, w1, b1, w2, b2))

    # Reference: same bf16 weight/input quantization, f32 math (matches the
    # module's semantics modulo the bf16 cast recommended for bandwidth).
    xq = x.astype(jnp.bfloat16).astype(jnp.float32)
    w1f = w1.astype(jnp.float32)
    w2f = w2.astype(jnp.float32)
    h_ref = xq @ w1f + b_proj
    ref = jax.nn.sigmoid(h_ref @ w2f + b_out)

    np.testing.assert_allclose(np.asarray(out), np.asarray(ref),
                               rtol=2e-2, atol=2e-2)

    print("KERNEL_OK")
</pallas_src>

<mosaic_0001>
module attributes {stable_mosaic.version = 11 : i64} {
  func.func @_projection_kernel(%arg0: i32, %arg1: memref<8x512xbf16, #tpu.memory_space<vmem>>, %arg2: memref<512x128xbf16, #tpu.memory_space<vmem>>, %arg3: memref<1x128xf32, #tpu.memory_space<vmem>>, %arg4: memref<8x128xbf16, #tpu.memory_space<vmem>>, %arg5: memref<8x128xf32, #tpu.memory_space<vmem>>) attributes {dimension_semantics = [#tpu.dimension_semantics<arbitrary>], iteration_bounds = array<i64: 4>, scalar_prefetch = 0 : i64, scratch_operands = 1 : i64, tpu.core_type = #tpu.core_type<tc>, window_params = [{transform_indices = @transform_0, window_bounds = array<i64: 8, 512>}, {transform_indices = @transform_1, window_bounds = array<i64: 512, 128>}, {pipeline_mode = #tpu.pipeline_mode<synchronous>, transform_indices = @transform_2, window_bounds = array<i64: 1, 128>}, {pipeline_mode = #tpu.pipeline_mode<synchronous>, transform_indices = @transform_3, window_bounds = array<i64: 8, 128>}]} {
    %c0_i32 = arith.constant 0 : i32
    %0 = arith.cmpi eq, %arg0, %c0_i32 : i32
    %1 = arith.extui %0 : i1 to i32
    %c0_i32_0 = arith.constant 0 : i32
    %2 = arith.cmpi ne, %1, %c0_i32_0 : i32
    scf.if %2 {
      %cst_9 = arith.constant 0.000000e+00 : f32
      %12 = vector.broadcast %cst_9 : f32 to vector<8x128xf32>
      %c0_10 = arith.constant 0 : index
      %c0_11 = arith.constant 0 : index
      %13 = vector.load %arg5[%c0_10, %c0_11] : memref<8x128xf32, #tpu.memory_space<vmem>>, vector<8x128xf32>
      tpu.vector_store %arg5[%c0_10, %c0_11], %12 {strides = array<i32>} : memref<8x128xf32, #tpu.memory_space<vmem>>, vector<8x128xf32>,
    } else {
    }
    %c0 = arith.constant 0 : index
    %c0_1 = arith.constant 0 : index
    %3 = vector.load %arg5[%c0, %c0_1] : memref<8x128xf32, #tpu.memory_space<vmem>>, vector<8x128xf32>
    %c0_2 = arith.constant 0 : index
    %c0_3 = arith.constant 0 : index
    %4 = vector.load %arg1[%c0_2, %c0_3] : memref<8x512xbf16, #tpu.memory_space<vmem>>, vector<8x512xbf16>
    %c0_4 = arith.constant 0 : index
    %c0_5 = arith.constant 0 : index
    %5 = vector.load %arg2[%c0_4, %c0_5] : memref<512x128xbf16, #tpu.memory_space<vmem>>, vector<512x128xbf16>
    %cst = arith.constant dense<0.000000e+00> : vector<8x128xf32>
    %6 = tpu.matmul %4, %5, %cst {dimension_numbers = #tpu.dot_dimension_numbers<[1], [0], [0], [1], [0, 0, 1, 1], [], []>} : vector<8x512xbf16>, vector<512x128xbf16>, vector<8x128xf32> -> vector<8x128xf32>
    %7 = arith.addf %3, %6 : vector<8x128xf32>
    %c0_6 = arith.constant 0 : index
    %c0_7 = arith.constant 0 : index
    %8 = vector.load %arg5[%c0_6, %c0_7] : memref<8x128xf32, #tpu.memory_space<vmem>>, vector<8x128xf32>
    tpu.vector_store %arg5[%c0_6, %c0_7], %7 {strides = array<i32>} : memref<8x128xf32, #tpu.memory_space<vmem>>, vector<8x128xf32>,
    %c3_i32 = arith.constant 3 : i32
    %9 = arith.cmpi eq, %arg0, %c3_i32 : i32
    %10 = arith.extui %9 : i1 to i32
    %c0_i32_8 = arith.constant 0 : i32
    %11 = arith.cmpi ne, %10, %c0_i32_8 : i32
    scf.if %11 {
      %c0_9 = arith.constant 0 : index
      %c0_10 = arith.constant 0 : index
      %12 = vector.load %arg5[%c0_9, %c0_10] : memref<8x128xf32, #tpu.memory_space<vmem>>, vector<8x128xf32>
      %c0_11 = arith.constant 0 : index
      %c0_12 = arith.constant 0 : index
      %13 = vector.load %arg3[%c0_11, %c0_12] : memref<1x128xf32, #tpu.memory_space<vmem>>, vector<1x128xf32>
      %14 = vector.broadcast %13 : vector<1x128xf32> to vector<8x128xf32>
      %15 = arith.addf %12, %14 : vector<8x128xf32>
      %16 = arith.truncf %15 : vector<8x128xf32> to vector<8x128xbf16>
      %c0_13 = arith.constant 0 : index
      %c0_14 = arith.constant 0 : index
      %17 = vector.load %arg4[%c0_13, %c0_14] : memref<8x128xbf16, #tpu.memory_space<vmem>>, vector<8x128xbf16>
      tpu.vector_store %arg4[%c0_13, %c0_14], %16 {strides = array<i32>} : memref<8x128xbf16, #tpu.memory_space<vmem>>, vector<8x128xbf16>,
    } else {
    }
    return
  }
  func.func @transform_0(%arg0: i32) -> (i32, i32) {
    %c0_i32 = arith.constant 0 : i32
    %c0_i32_0 = arith.constant 0 : i32
    return %c0_i32, %arg0 : i32, i32
  }
  func.func @transform_1(%arg0: i32) -> (i32, i32) {
    %c0_i32 = arith.constant 0 : i32
    %c0_i32_0 = arith.constant 0 : i32
    return %arg0, %c0_i32 : i32, i32
  }
  func.func @transform_2(%arg0: i32) -> (i32, i32) {
    %c0_i32 = arith.constant 0 : i32
    %c0_i32_0 = arith.constant 0 : i32
    %c0_i32_1 = arith.constant 0 : i32
    return %c0_i32, %c0_i32_0 : i32, i32
  }
  func.func @transform_3(%arg0: i32) -> (i32, i32) {
    %c0_i32 = arith.constant 0 : i32
    %c0_i32_0 = arith.constant 0 : i32
    %c0_i32_1 = arith.constant 0 : i32
    return %c0_i32, %c0_i32_0 : i32, i32
  }
}

</mosaic_0001>

<bundles_post_ra>
// kernel: tpu_custom_call.1
= control target key start
LH: loop header
LB: loop body
LE: loop exit
PB: predicated region body
PF: predicated region fallthrough
CT: control target
= control target key end

     0   :  { %8 = vsyncpa [#allocation4], 0  ;;  %s1208_s0 = inlined_call_operand.hbm [shape: bf16[8,2048], index: 0, kind: input, shape index: {}]   ;;  %s1209_s1 = inlined_call_operand.hbm [shape: bf16[2048,128], index: 1, kind: input, shape index: {}]   ;;  %s1210_s2 = inlined_call_operand.vmem [shape: f32[1,128], index: 2, kind: input, shape index: {}]   ;;  %s1211_s3 = inlined_call_operand.hbm [shape: bf16[8,128], index: 3, kind: output, shape index: {}]  }
   0x1   :  { %10 = vsyncpa [#allocation4 + $0x1], 0 }
   0x2   :  { %11 = vsyncpa [#allocation7], 0 }
   0x3   :  { %13 = vsyncpa [#allocation7 + $0x1], 0 }
   0x4   :  { %14 = vsyncpa [#allocation5], 0  ;;  %s1038_s12 = smov 0   ;;  %s1040_s13 = smov 0  }
   0x5   :  { %s1042_s14 = smov 0   ;;  %s1044_s15 = smov 0  }
   0x6 LB: > { %s1057_s16 = sadd.s32 4294967295, %s1012_s15   ;;  %s1060_s17 = sadd.s32 1, %s1012_s15   ;;  %s1012_s15 = sphi %s1044_s15, %s1219_s15   ;;  %s1008_s14 = sphi %s1042_s14, %s1218_s14   ;;  %s1004_s13 = sphi %s1040_s13, %s1217_s13   ;;  %s1000_s12 = sphi %s1038_s12, %s1216_s12  }
   0x7   : > { %s24_s18 = ssub.s32 %s1012_s15, %s1060_s17  ;;  %s27_s19 = sadd.s32 1, %s1008_s14 }
   0x8   : > { %p25_p0 = scmp.eq.s32.totalorder %s24_s18, 0  ;;  %p34_p1 = scmp.ne.s32.totalorder %s1008_s14, %s1004_s13 }
   0x9   : > { %p35_p2 = scmp.eq.s32.totalorder %s1012_s15, 0  ;;  %p40_p3 = scmp.ne.s32.totalorder %s1004_s13, %s1000_s12 }
   0xa   : > { %s1070_s20 = scalar_select %p25_p0, %s1008_s14, %s27_s19  }
   0xb   : > { %p1072_p4 = por %p35_p2, %p34_p1  ;;  %p41_p5 = scmp.eq.s32.totalorder %s1057_s16, 0 }
   0xc   : > { %p842_p6 = scmp.lt.s32.totalorder %s1012_s15, 4  ;;  %s1083_s23 = sand.u32 1, %s1008_s14  }
   0xd   : > { %p1078_p7 = por %p41_p5, %p40_p3  ;;  %s650_s24 = sshll.u32 %s1083_s23, 4 }
   0xe   : > { %s793_s25 = sshll.u32 %s1012_s15, 4  ;;  %s139_s29 = scalar_lea.vmem [#allocation3], %s650_s24 }
   0xf   : > { %s144_s28 = scalar_lea.hbm %s1208_s0, %s793_s25  ;;  %s148_s30 = sshll.u32 %s139_s29, 4  ;;  %s149_s30 = int_to_ptr.vmem [resolvable:$true] %s148_s30 }
  0x10   : > { %s146_s4 = sshll.u32 %s144_s28, 4  ;;  %p1092_p8 = pnand %p842_p6, %p1072_p4  ;;  %s147_s4 = int_to_ptr.hbm [resolvable:$true] %s146_s4 }
  0x11   : > { %p656_p9 = scmp.ge.s32.totalorder %s1012_s15, 1  ;;  %p175_p10 = scmp.lt.s32.totalorder %s1012_s15, 5 }
  0x12   : > { %s136_s6 = scalar_lea.sflag [#allocation4], %s1083_s23  ;;  %s882_s7 = sshra.s32 %s147_s4, 4  ;;  %s883_s7 = int_to_ptr.hbm [resolvable:$true] %s882_s7 }
  0x13   : > { %s884_s8 = scalar_lea.hbm %s883_s7, 16  ;;  %p886_p12 = pneg %p1092_p8 }
  0x14   : > { %p885_p11 = scmp.ne.s32.totalorder %s883_s7, %s884_s8  ;;  %s889_s11 = scalar_lea.hbm %s1208_s0, 64 }
  0x15   : > { %p890_p1 = scmp.lt.s32.totalorder %s883_s7, %s1208_s0  ;;  %p891_p2 = scmp.lt.s32.totalorder %s889_s11, %s884_s8 }
  0x16   : > { %p887_p13 = pnand %p886_p12, %p885_p11 }
  0x17   : > { %p892_p3 = por %p891_p2, %p890_p1 }
  0x18   : > { %p888_p0 = pneg %p887_p13 }
  0x1a   : > { %p893_p4 = pnand %p892_p3, %p888_p0 }
  0x1c   : > { %896 = shalt.err (!%p893_p4)
}
  0x1d   : > { %838 = dma.hbm_to_vmem [thread:$0]  (!%p1092_p8), %s147_s4, 256, %s149_s30, %s136_s6  }
  0x1e   : > { %p1116_p5 = pnand %p656_p9, %p175_p10  ;;  %s653_s21 = sshll.u32 %s1083_s23, 8 }
  0x1f   : > { %s794_s24 = sshll.u32 %s1012_s15, 8  ;;  %s159_s28 = scalar_lea.vmem [#allocation6], %s653_s21 }
  0x20   : > { %s164_s27 = scalar_lea.hbm %s1209_s1, %s794_s24  ;;  %s167_s29 = sshll.u32 %s159_s28, 4  ;;  %s168_s29 = int_to_ptr.vmem [resolvable:$true] %s167_s29 }
  0x21   : > { %s165_s7 = sshll.u32 %s164_s27, 4  ;;  %s156_s8 = scalar_lea.sflag [#allocation7], %s1083_s23  ;;  %s166_s7 = int_to_ptr.hbm [resolvable:$true] %s165_s7 }
  0x22   : > { %s912_s9 = sshra.s32 %s166_s7, 4  ;;  %s919_s6 = scalar_lea.hbm %s1209_s1, 1024  ;;  %s913_s9 = int_to_ptr.hbm [resolvable:$true] %s912_s9 }
  0x23   : > { %s914_s30 = scalar_lea.hbm %s913_s9, 256  ;;  %p920_p11 = scmp.lt.s32.totalorder %s913_s9, %s1209_s1 }
  0x24   : > { %p915_p6 = scmp.ne.s32.totalorder %s913_s9, %s914_s30  ;;  %p921_p13 = scmp.lt.s32.totalorder %s919_s6, %s914_s30 }
  0x26   : > { %p917_p9 = pnand %p915_p6, %p886_p12  ;;  %p922_p0 = por %p921_p13, %p920_p11 }
  0x28   : > { %p918_p10 = pneg %p917_p9 }
  0x2a   : > { %p923_p1 = pnand %p922_p0, %p918_p10 }
  0x2c   : > { %926 = shalt.err (!%p923_p1)
}
  0x2d   : > { %s1014_s23 = smov 64   ;;  %s1015_s12 = smov 4  }
  0x2e   : > { %841 = dma.hbm_to_vmem [thread:$0]  (!%p1092_p8), %s166_s7, 4096, %s168_s29, %s156_s8, %s1014_s23, %s1014_s23, %s1015_s12  }
  0x2f   : > { %179 = sbr.rel (%p1116_p5) target bundleno = 255 (0xff), region = 32  ;;  %s181_s18 = sand.u32 (!%p1116_p5), 1, %s1004_s13  }
  0x30   : > { %s657_s21 = sshll.u32 (!%p1116_p5), %s181_s18, 4  ;;  %s182_s24 = scalar_lea.sflag (!%p1116_p5), [#allocation4], %s181_s18 }
  0x31   : > { %s1140_s25 = scalar_lea.vmem (!%p1116_p5), [#allocation3], %s657_s21 }
  0x34   : > { %987 = dma.done.wait (%p1078_p7), %s182_s24, 256  }
  0x35   : > { %989 = vsyncadd (%p1078_p7), %s182_s24, 4294967040  ;;  %s658_s26 = sshll.u32 %s181_s18, 8  ;;  %s192_s27 = scalar_lea.sflag [#allocation7], %s181_s18 }
  0x36   : > { %s1146_s5 = scalar_lea.vmem [#allocation6], %s658_s26 }
  0x37   : > { %991 = dma.done.wait (%p1078_p7), %s192_s27, 4096  }
  0x38   : > { %993 = vsyncadd (%p1078_p7), %s192_s27, 4294963200  ;;  %p659_p8 = scmp.ne.s32.totalorder %s1057_s16, 0 }
  0x3a   : > { %224 = sbr.rel (%p659_p8) target bundleno = 65 (0x41), region = 44 }
  0x3f   : > { %v1016_v0 = vmov 0.0  }
  0x40   : > { %225 = vst [vmem:[#allocation2] sm:$0xff] %v1016_v0 }
  0x41 PF: > { %v802_v1 = vld [vmem:[%s1146_s5 + $0x38] sm:$0xff]  ;;  %v801_v5 = vld [vmem:[%s1146_s5 + $0x30] sm:$0xff]  ;;  %v800_v9 = vld [vmem:[%s1146_s5 + $0x28] sm:$0xff]  ;;  %p788_p7 = scmp.ne.s32.totalorder %s1057_s16, 3 }
  0x42   : > { %v810_v2 = vld [vmem:[%s1146_s5 + $0x78] sm:$0xff]  ;;  %499 = vmatpush.bf16.msra.mxu0 %v802_v1  ;;  %v809_v6 = vld [vmem:[%s1146_s5 + $0x70] sm:$0xff]  ;;  %v808_v10 = vld [vmem:[%s1146_s5 + $0x68] sm:$0xff] }
  0x43   : > { %v818_v3 = vld [vmem:[%s1146_s5 + $0xb8] sm:$0xff]  ;;  %512 = vmatpush.bf16.msra.mxu1 %v810_v2  ;;  %v817_v7 = vld [vmem:[%s1146_s5 + $0xb0] sm:$0xff]  ;;  %v816_v11 = vld [vmem:[%s1146_s5 + $0xa8] sm:$0xff] }
  0x44   : > { %v826_v4 = vld [vmem:[%s1146_s5 + $0xf8] sm:$0xff]  ;;  %525 = vmatpush.bf16.msra.mxu2 %v818_v3  ;;  %v825_v8 = vld [vmem:[%s1146_s5 + $0xf0] sm:$0xff]  ;;  %v824_v12 = vld [vmem:[%s1146_s5 + $0xe8] sm:$0xff] }
  0x45   : > { %538 = vmatpush.bf16.msra.mxu3 %v826_v4  ;;  %v799_v13 = vld [vmem:[%s1146_s5 + $0x20] sm:$0xff]  ;;  %v798_v17 = vld [vmem:[%s1146_s5 + $0x18] sm:$0xff]  ;;  %v797_v21 = vld [vmem:[%s1146_s5 + $0x10] sm:$0xff] }
  0x46   : > { %500 = vmatpush.bf16.msra.mxu0 %v801_v5  ;;  %v807_v14 = vld [vmem:[%s1146_s5 + $0x60] sm:$0xff]  ;;  %v806_v18 = vld [vmem:[%s1146_s5 + $0x58] sm:$0xff]  ;;  %v805_v22 = vld [vmem:[%s1146_s5 + $0x50] sm:$0xff] }
  0x47   : > { %513 = vmatpush.bf16.msra.mxu1 %v809_v6  ;;  %v815_v15 = vld [vmem:[%s1146_s5 + $0xa0] sm:$0xff]  ;;  %v814_v19 = vld [vmem:[%s1146_s5 + $0x98] sm:$0xff]  ;;  %v813_v23 = vld [vmem:[%s1146_s5 + $0x90] sm:$0xff] }
  0x48   : > { %526 = vmatpush.bf16.msra.mxu2 %v817_v7  ;;  %v823_v16 = vld [vmem:[%s1146_s5 + $0xe0] sm:$0xff]  ;;  %v822_v20 = vld [vmem:[%s1146_s5 + $0xd8] sm:$0xff]  ;;  %v821_v24 = vld [vmem:[%s1146_s5 + $0xd0] sm:$0xff] }
  0x49   : > { %539 = vmatpush.bf16.msra.mxu3 %v825_v8  ;;  %v796_v25 = vld [vmem:[%s1146_s5 + $0x8] sm:$0xff]  ;;  %v227_v27 = vld [vmem:[%s1140_s25] sm:$0xff]  ;;  %v226_v51 = vld [vmem:[#allocation2] sm:$0xff] }
  0x4a   : > { %501 = vmatpush.bf16.msra.mxu0 %v800_v9  ;;  %v804_v26 = vld [vmem:[%s1146_s5 + $0x48] sm:$0xff]  ;;  %v295_v31 = vunpack.c.l.b16 %v227_v27  ;;  %v296_v32 = vunpack.c.h.b16 %v227_v27  ;;  %v795_v33 = vld [vmem:[%s1146_s5] sm:$0xff] }
  0x4b   : > { %514 = vmatpush.bf16.msra.mxu1 %v808_v10  ;;  %v812_v28 = vld [vmem:[%s1146_s5 + $0x88] sm:$0xff]  ;;  %v803_v34 = vld [vmem:[%s1146_s5 + $0x40] sm:$0xff] }
  0x4c   : > { %527 = vmatpush.bf16.msra.mxu2 %v816_v11  ;;  %v820_v29 = vld [vmem:[%s1146_s5 + $0xc8] sm:$0xff]  ;;  %v811_v37 = vld [vmem:[%s1146_s5 + $0x80] sm:$0xff]  ;;  %v299_v39 = vpack.c.b16 %v295_v31, %v295_v31  ;;  %v300_v40 = vpack.c.b16 %v296_v32, %v296_v32 }
  0x4d   : > { %540 = vmatpush.bf16.msra.mxu3 %v824_v12  ;;  %v228_v30 = vld [vmem:[%s1140_s25 + $0x8] sm:$0xff]  ;;  %v819_v38 = vld [vmem:[%s1146_s5 + $0xc0] sm:$0xff] }
  0x4e   : > { %502 = vmatpush.bf16.msra.mxu0 %v799_v13  ;;  %v297_v35 = vunpack.c.l.b16 %v228_v30  ;;  %v298_v36 = vunpack.c.h.b16 %v228_v30 }
  0x4f   : > { %515 = vmatpush.bf16.msra.mxu1 %v807_v14 }
  0x50   : > { %528 = vmatpush.bf16.msra.mxu2 %v815_v15  ;;  %v301_v41 = vpack.c.b16 %v297_v35, %v297_v35  ;;  %v302_v42 = vpack.c.b16 %v298_v36, %v298_v36 }
  0x51   : > { %541 = vmatpush.bf16.msra.mxu3 %v823_v16 }
  0x52   : > { %503 = vmatpush.bf16.msra.mxu0 %v798_v17 }
  0x53   : > { %516 = vmatpush.bf16.msra.mxu1 %v806_v18 }
  0x54   : > { %529 = vmatpush.bf16.msra.mxu2 %v814_v19 }
  0x55   : > { %542 = vmatpush.bf16.msra.mxu3 %v822_v20 }
  0x56   : > { %504 = vmatpush.bf16.msra.mxu0 %v797_v21 }
  0x57   : > { %517 = vmatpush.bf16.msra.mxu1 %v805_v22 }
  0x58   : > { %530 = vmatpush.bf16.msra.mxu2 %v813_v23 }
  0x59   : > { %543 = vmatpush.bf16.msra.mxu3 %v821_v24 }
  0x5a   : > { %505 = vmatpush.bf16.msra.mxu0 %v796_v25 }
  0x5b   : > { %518 = vmatpush.bf16.msra.mxu1 %v804_v26 }
  0x5c   : > { %531 = vmatpush.bf16.msra.mxu2 %v812_v28 }
  0x5d   : > { %544 = vmatpush.bf16.msra.mxu3 %v820_v29 }
  0x5e   : > { %506 = vmatpush.bf16.msra.mxu0 %v795_v33 }
  0x5f   : > { %519 = vmatpush.bf16.msra.mxu1 %v803_v34 }
  0x60   : > { %532 = vmatpush.bf16.msra.mxu2 %v811_v37 }
  0x61   : > { %545 = vmatpush.bf16.msra.mxu3 %v819_v38  ;;  %507 = vmatmul.bf16.vlgmr.msra.gmra.mxu0 %v299_v39 }
  0x62   : > { %520 = vmatmul.bf16.vlgmr.msra.gmra.mxu1 %v300_v40 }
  0x63   : > { %533 = vmatmul.bf16.vlgmr.msra.gmra.mxu2 %v301_v41 }
  0x64   : > { %546 = vmatmul.bf16.vlgmr.msra.gmra.mxu3 %v302_v42 }
  0xde   : > { %v508_v43 = vpop.f32.mrf.mxu0 }
  0xdf   : > { %v521_v44 = vpop.f32.mrf.mxu1 }
  0xe0   : > { %v522_v45 = vadd.f32 %v521_v44, %v508_v43 }
  0xe6   : > { %v534_v46 = vpop.f32.mrf.mxu2  ;;  %v510_v49 = vpop.f32.mrf.mxu0 }
  0xe7   : > { %v547_v47 = vpop.f32.mrf.mxu3  ;;  %v535_v48 = vadd.f32 %v534_v46, %v522_v45  ;;  %v523_v50 = vpop.f32.mrf.mxu1 }
  0xe9   : > { %v548_v52 = vadd.f32 %v547_v47, %v535_v48 }
  0xeb   : > { %v551_v53 = vadd.f32 %v548_v52, %v226_v51  ;;  %556 = sbr.rel (%p788_p7) target bundleno = 250 (0xfa), region = 48 }
  0xed   : > { %552 = vst [vmem:[#allocation2] sm:$0xff] %v551_v53 }
  0xee   : > { %v536_v54 = vpop.f32.mrf.mxu2 }
  0xef   : > { %v549_v55 = vpop.f32.mrf.mxu3 }
  0xf0   : > { %v881_v57 = vld [vmem:[%s1210_s2] ss:$0 sm:$0xff] }
  0xf4   : > { %v557_v56 = vld [vmem:[#allocation2] sm:$0xff] }
  0xf5   : > { %v562_v58 = vadd.f32 %v881_v57, %v557_v56 }
  0xf7   : > { %v563_v59 = vpack.c.bf16 %v562_v58, %v562_v58 }
  0xf9   : > { %564 = vst [vmem:[#allocation8] sm:$0xf] %v563_v59 }
  0xfa PF: > { %p843_p12 = scmp.eq.s32.totalorder %s1057_s16, 3  ;;  %s1017_s28 = smov [#allocation8]  }
  0xfb   : > { %s571_s29 = sshll.u32 %s1017_s28, 4  ;;  %s573_s9 = sshll.u32 %s1211_s3, 4  ;;  %s572_s29 = int_to_ptr.vmem [resolvable:$true] %s571_s29  ;;  %s574_s9 = int_to_ptr.hbm [resolvable:$true] %s573_s9 }
  0xfc   : > { %832 = dma.vmem_to_hbm [thread:$0]  (%p843_p12), %s572_s29, 64, %s574_s9, [#allocation5]  }
  0xfd   : > { %995 = dma.done.wait (%p843_p12), [#allocation5], 64  }
  0xfe   : > { %997 = vsyncadd (%p843_p12), [#allocation5], 4294967232 }
  0xff PF: > { %p17_p2 = scmp.ge.s32.totalorder %s1060_s17, 6   ;;  %s1216_s12 = smov %s1004_s13 }
 0x100   : > { %s1217_s13 = smov %s1008_s14  ;;  %s1218_s14 = smov %s1070_s20 }
 0x101   : > { %s1219_s15 = smov %s1060_s17  ;;  %19 = sbr.rel (!%p17_p2) target bundleno = 6 (0x6), region = 90 }
 0x106   :  { %587 = vsyncpa [#allocation4], 1 }
 0x107   :  { %589 = vsyncpa [#allocation4 + $0x1], 1 }
 0x108   :  { %590 = vsyncpa [#allocation7], 1 }
 0x109   :  { %592 = vsyncpa [#allocation7 + $0x1], 1 }
 0x10a   :  { %593 = vsyncpa [#allocation5], 1 }
 0x10b   :  { %595 = vsyncpa [#allocation5 + $0x1], 1 }

</bundles_post_ra>
